<compile_context>
chip_gen: v7x
topology: tpu7x:2x2x1
jax: 0.10.0
libtpu: 0.0.40
codegen_flags: <defaults>
</compile_context>

<pallas_src>
import functools

import numpy as np

import jax
import jax.numpy as jnp
from jax.experimental import pallas as pl
from jax.experimental.pallas import tpu as pltpu

LEAKY_ALPHA = 0.2  # LeakyReLU negative slope (the `alpha` ctor arg)


def project_kernel(x_ref, w_ref, h_ref):
    """h_all[rows, :] = x[rows, :] @ W_flat  (all heads fused, bf16 MXU, f32 accumulate)."""
    x_bf = x_ref[...].astype(jnp.bfloat16)
    h_ref[...] = jnp.dot(
        x_bf, w_ref[...], preferred_element_type=jnp.float32
    ).astype(jnp.bfloat16)


def gat_attn_kernel(kblk_ref, cnt_ref, hk_ref, f1_ref, f2_ref, adj_ref,
                    out_ref, acc_ref, rs_ref, *, alpha):
    """One (head, query-tile, sparse-key-step) of GAT attention.

    e_ij = exp(-LeakyReLU(f1_i + f2_j)) on edges (0 elsewhere);
    h'_i = (sum_j e_ij h_j) / (sum_j e_ij);  out = ELU(h').
    Accumulators live in VMEM scratch across the key-step (reduction) axis.
    Steps with s >= cnt[qi] are padding (repeat the previous key block -> no DMA) and
    skip all compute.
    """
    qi = pl.program_id(1)
    s = pl.program_id(2)

    @pl.when(s == 0)
    def _init():
        acc_ref[...] = jnp.zeros_like(acc_ref)
        rs_ref[...] = jnp.zeros_like(rs_ref)

    @pl.when(s < cnt_ref[qi])
    def _accumulate():
        f1 = f1_ref[...]                                  # (tq, 1)  f32
        f2 = f2_ref[...]                                  # (1, tk)  f32
        scores = f1 + f2                                  # (tq, tk) f32
        lrelu = jnp.where(scores > 0, scores, alpha * scores)
        # Masked exp via select: non-edges contribute exactly 0 (no inf*0 NaN hazard).
        mask = adj_ref[...].astype(jnp.int32) > 0
        e = jnp.where(mask, jnp.exp(-lrelu), 0.0)         # (tq, tk) f32
        rs_ref[...] += jnp.sum(e, axis=-1, keepdims=True)
        acc_ref[...] += jnp.dot(e.astype(jnp.bfloat16), hk_ref[...],
                                preferred_element_type=jnp.float32)

    @pl.when(s == pl.num_programs(2) - 1)
    def _finalize():
        # Guard isolated rows (all-zero adjacency) against 0/0.
        denom = jnp.maximum(rs_ref[...], jnp.float32(1e-30))
        h_prime = acc_ref[...] * pl.reciprocal(denom, approx=True)
        # ELU (exp(x)-1 on the negative branch), matches the reference activation.
        out_ref[...] = jnp.where(h_prime > 0, h_prime, jnp.exp(h_prime) - 1.0)


def graph_attention_layer(x, adj, W, A, *, alpha=LEAKY_ALPHA, tq=512, tk=512, tm=512):
    """Forward of GraphAttentionLayer (concat=True, eval mode).  Returns (h, adj).

    x   : (N, Fin) f32 node features
    adj : (N, N)   0/1 edge mask (nonzeros == torch sparse indices)
    W   : (H, Fin, Fout) per-head projection weights
    A   : (H, 1, 2*Fout) per-head attention vectors

    Note: the block-sparse schedule (which key blocks each query block touches) is built
    on the host from the adjacency, so this wrapper is not meant to be jitted end-to-end.
    """
    H, Fin, Fout = W.shape
    N = x.shape[0]
    HF = H * Fout
    tq, tk, tm = min(tq, N), min(tk, N), min(tm, N)
    assert N % tq == 0 and N % tk == 0 and N % tm == 0, "N must divide the tile sizes"
    assert Fout % 128 == 0, "Fout must be lane-aligned (multiple of 128) for fused output"
    assert tq % 32 == 0 and tk % 128 == 0 and tm % 8 == 0, "tile alignment"

    NQ, NK = N // tq, N // tk

    # ---- head-fused projection: h_all[:, h*Fout:(h+1)*Fout] = x @ W[h]  (bf16) ---------
    w_flat = jnp.transpose(W, (1, 0, 2)).reshape(Fin, HF).astype(jnp.bfloat16)
    h_all = pl.pallas_call(
        project_kernel,
        out_shape=jax.ShapeDtypeStruct((N, HF), jnp.bfloat16),
        grid=(N // tm,),
        in_specs=[
            pl.BlockSpec((tm, Fin), lambda i: (i, 0)),
            pl.BlockSpec((Fin, HF), lambda i: (0, 0)),
        ],
        out_specs=pl.BlockSpec((tm, HF), lambda i: (i, 0)),
        compiler_params=pltpu.CompilerParams(dimension_semantics=("parallel",)),
    )(x, w_flat)

    # ---- per-node attention terms (hoisted out of the inner kj loop) -------------------
    h_heads = h_all.reshape(N, H, Fout).astype(jnp.float32)
    a_l = A[:, 0, :Fout]                                  # (H, Fout) source term
    a_r = A[:, 0, Fout:]                                  # (H, Fout) target term
    f1 = jnp.einsum("nhf,hf->hn", h_heads, a_l).reshape(H, N, 1)   # (H, N, 1) f32
    f2 = jnp.einsum("nhf,hf->hn", h_heads, a_r).reshape(H, 1, N)   # (H, 1, N) f32

    # ---- block-sparse schedule: nonzero key blocks per query block (host side) ---------
    adj_host = np.asarray(jax.device_get(adj))
    occ = adj_host.reshape(NQ, tq, NK, tk).any(axis=(1, 3))        # (NQ, NK) bool
    counts = occ.sum(axis=1).astype(np.int32)                      # (NQ,)
    nsteps = int(max(1, counts.max()))
    kblk = np.zeros((NQ, nsteps), dtype=np.int32)
    for qb in range(NQ):
        nz = np.nonzero(occ[qb])[0].astype(np.int32)
        if nz.size == 0:
            nz = np.zeros((1,), dtype=np.int32)                    # dummy; count=0 masks it
        kblk[qb, : nz.size] = nz
        kblk[qb, nz.size:] = nz[-1]        # pad by repeating last block -> DMA skipped
    kblk_flat = jnp.asarray(kblk.reshape(-1))                      # (NQ*nsteps,) int32
    counts_dev = jnp.asarray(counts)                               # (NQ,)      int32

    # adj as int8 mask: only compared with > 0; 4x less HBM traffic than f32.
    adj_i8 = (adj != 0).astype(jnp.int8)

    # Data-dependent index maps (page-table style, via scalar prefetch).
    def hk_map(h, qi, s, kb_ref, cnt_ref):
        return (kb_ref[qi * nsteps + s], h)

    def f1_map(h, qi, s, kb_ref, cnt_ref):
        return (h, qi, 0)

    def f2_map(h, qi, s, kb_ref, cnt_ref):
        return (h, 0, kb_ref[qi * nsteps + s])

    def adj_map(h, qi, s, kb_ref, cnt_ref):
        return (qi, kb_ref[qi * nsteps + s])

    def out_map(h, qi, s, kb_ref, cnt_ref):
        return (qi, h)

    kernel = functools.partial(gat_attn_kernel, alpha=alpha)
    h_cat = pl.pallas_call(
        kernel,
        out_shape=jax.ShapeDtypeStruct((N, HF), jnp.float32),
        grid_spec=pltpu.PrefetchScalarGridSpec(
            num_scalar_prefetch=2,
            grid=(H, NQ, nsteps),                      # sparse key steps last (reduction)
            in_specs=[
                pl.BlockSpec((tk, Fout), hk_map),           # h_k rows of head h (bf16)
                pl.BlockSpec((None, tq, 1), f1_map),        # f1 column (f32)
                pl.BlockSpec((None, 1, tk), f2_map),        # f2 row    (f32)
                pl.BlockSpec((tq, tk), adj_map),            # adj tile  (int8)
            ],
            # Head h writes its own lane-dense column slice of the concatenated output.
            out_specs=pl.BlockSpec((tq, Fout), out_map),
            scratch_shapes=[
                pltpu.VMEM((tq, Fout), jnp.float32),   # weighted-sum accumulator
                pltpu.VMEM((tq, 1), jnp.float32),      # rowsum accumulator
            ],
        ),
        compiler_params=pltpu.CompilerParams(
            dimension_semantics=("parallel", "parallel", "arbitrary"),
            vmem_limit_bytes=32 * 1024 * 1024,         # headroom on v7x's 64 MiB VMEM
        ),
    )(kblk_flat, counts_dev, h_all, f1, f2, adj_i8)

    # concat=True output is already (N, H*Fout); no wrapper transpose/reshape needed.
    return h_cat, adj


def reference(x, adj, W, A, alpha=LEAKY_ALPHA):
    """Pure-JAX f32 reference mirroring the PyTorch SpGraphAttentionLayer math."""
    outs = []
    for hd in range(W.shape[0]):
        h = x @ W[hd]
        a = A[hd]
        fout = h.shape[1]
        f1 = jnp.sum(h * a[0, :fout], axis=-1, keepdims=True)   # (N, 1)
        f2 = h @ a[0, fout:]                                    # (N,)
        scores = f1 + f2[None, :]
        lrelu = jnp.where(scores > 0, scores, alpha * scores)
        e = jnp.where(adj > 0, jnp.exp(-lrelu), 0.0)
        rowsum = e.sum(axis=1, keepdims=True)
        hp = (e @ h) / rowsum
        outs.append(jnp.where(hp > 0, hp, jnp.exp(hp) - 1.0))
    return jnp.concatenate(outs, axis=1)


if __name__ == "__main__":
    # Small but representative shapes: 512 nodes, 128-d input, 4 heads x 128 features.
    N, F_IN, F_OUT, HEADS = 512, 128, 128, 4

    key = jax.random.PRNGKey(0)
    kx, kw, ka = jax.random.split(key, 3)

    # Node features
    x = jax.random.normal(kx, (N, F_IN), dtype=jnp.float32)

    # Deterministic sparse adjacency: ring graph + self loops (every row has >= 1 edge),
    # plus two long-range edges so per-query-block edge-block counts differ (exercises the
    # block-sparse padding path).
    idx = jnp.arange(N)
    adj = jnp.zeros((N, N), dtype=jnp.float32)
    adj = adj.at[idx, idx].set(1.0)
    adj = adj.at[idx, (idx + 1) % N].set(1.0)
    adj = adj.at[idx, (idx - 1) % N].set(1.0)
    adj = adj.at[0, 300].set(1.0)
    adj = adj.at[300, 0].set(1.0)

    # Xavier-normal init with gain=1.414 (matches nn.init.xavier_normal_)
    gain = 1.414
    std_w = gain * (2.0 / (F_IN + F_OUT)) ** 0.5
    std_a = gain * (2.0 / (1 + 2 * F_OUT)) ** 0.5
    W = std_w * jax.random.normal(kw, (HEADS, F_IN, F_OUT), dtype=jnp.float32)
    A = std_a * jax.random.normal(ka, (HEADS, 1, 2 * F_OUT), dtype=jnp.float32)

    # Small tiles here so the block-sparse schedule has multiple key blocks to skip/pad;
    # defaults (512) are the perf-tuned choice for large N.
    h_out, adj_out = graph_attention_layer(x, adj, W, A, tq=128, tk=128, tm=256)
    h_out = jax.block_until_ready(h_out)

    h_ref = reference(x, adj, W, A)
    assert h_out.shape == (N, HEADS * F_OUT), h_out.shape
    max_err = float(jnp.max(jnp.abs(h_out - h_ref)))
    # bf16 projection + bf16 spmm vs f32 reference: relaxed tolerance (flash-attn style).
    assert jnp.allclose(h_out, h_ref, atol=1e-1, rtol=1e-2), max_err

    print("KERNEL_OK")
</pallas_src>

<mosaic_0001>
module attributes {stable_mosaic.version = 11 : i64} {
  func.func @project_kernel(%arg0: i32, %arg1: memref<256x128xf32, #tpu.memory_space<vmem>>, %arg2: memref<128x512xbf16, #tpu.memory_space<vmem>>, %arg3: memref<256x512xbf16, #tpu.memory_space<vmem>>) attributes {dimension_semantics = [#tpu.dimension_semantics<parallel>], iteration_bounds = array<i64: 2>, scalar_prefetch = 0 : i64, scratch_operands = 0 : i64, tpu.core_type = #tpu.core_type<tc>, window_params = [{transform_indices = @transform_0, window_bounds = array<i64: 256, 128>}, {pipeline_mode = #tpu.pipeline_mode<synchronous>, transform_indices = @transform_1, window_bounds = array<i64: 128, 512>}, {transform_indices = @transform_2, window_bounds = array<i64: 256, 512>}]} {
    %c0 = arith.constant 0 : index
    %c0_0 = arith.constant 0 : index
    %0 = vector.load %arg1[%c0, %c0_0] : memref<256x128xf32, #tpu.memory_space<vmem>>, vector<256x128xf32>
    %1 = arith.truncf %0 : vector<256x128xf32> to vector<256x128xbf16>
    %c0_1 = arith.constant 0 : index
    %c0_2 = arith.constant 0 : index
    %2 = vector.load %arg2[%c0_1, %c0_2] : memref<128x512xbf16, #tpu.memory_space<vmem>>, vector<128x512xbf16>
    %cst = arith.constant dense<0.000000e+00> : vector<256x512xf32>
    %3 = tpu.matmul %1, %2, %cst {dimension_numbers = #tpu.dot_dimension_numbers<[1], [0], [0], [1], [0, 0, 1, 1], [], []>} : vector<256x128xbf16>, vector<128x512xbf16>, vector<256x512xf32> -> vector<256x512xf32>
    %4 = arith.truncf %3 : vector<256x512xf32> to vector<256x512xbf16>
    %c0_3 = arith.constant 0 : index
    %c0_4 = arith.constant 0 : index
    %5 = vector.load %arg3[%c0_3, %c0_4] : memref<256x512xbf16, #tpu.memory_space<vmem>>, vector<256x512xbf16>
    tpu.vector_store %arg3[%c0_3, %c0_4], %4 {strides = array<i32>} : memref<256x512xbf16, #tpu.memory_space<vmem>>, vector<256x512xbf16>,
    return
  }
  func.func @transform_0(%arg0: i32) -> (i32, i32) {
    %c0_i32 = arith.constant 0 : i32
    %c0_i32_0 = arith.constant 0 : i32
    return %arg0, %c0_i32 : i32, i32
  }
  func.func @transform_1(%arg0: i32) -> (i32, i32) {
    %c0_i32 = arith.constant 0 : i32
    %c0_i32_0 = arith.constant 0 : i32
    %c0_i32_1 = arith.constant 0 : i32
    return %c0_i32, %c0_i32_0 : i32, i32
  }
  func.func @transform_2(%arg0: i32) -> (i32, i32) {
    %c0_i32 = arith.constant 0 : i32
    %c0_i32_0 = arith.constant 0 : i32
    return %arg0, %c0_i32 : i32, i32
  }
}

</mosaic_0001>

<bundles_post_ra>
// kernel: tpu_custom_call.1
= control target key start
LH: loop header
LB: loop body
LE: loop exit
PB: predicated region body
PF: predicated region fallthrough
CT: control target
= control target key end

     0   :  { %7 = vsyncpa [#allocation3], 0  ;;  %s2134_s0 = inlined_call_operand.hbm [shape: f32[512,128], index: 0, kind: input, shape index: {}]   ;;  %s2135_s1 = inlined_call_operand.hbm [shape: bf16[128,512], index: 1, kind: input, shape index: {}]   ;;  %s2136_s2 = inlined_call_operand.hbm [shape: bf16[512,512], index: 2, kind: output, shape index: {}]  }
   0x1   :  { %9 = vsyncpa [#allocation3 + $0x1], 0 }
   0x2   :  { %10 = vsyncpa [#allocation6], 0 }
   0x3   :  { %11 = vsyncpa [#allocation4], 0 }
   0x4   :  { %13 = vsyncpa [#allocation4 + $0x1], 0  ;;  %s1799_s9 = smov 0   ;;  %s1801_s10 = smov 0  }
   0x5   :  { %s1803_s11 = smov 0   ;;  %s1805_s12 = smov 0  }
   0x6 LB: > { %s1820_s13 = sadd.s32 4294967295, %s1772_s12   ;;  %s1352_s14 = sadd.s32 4294967294, %s1772_s12   ;;  %s1772_s12 = sphi %s1805_s12, %s2156_s12   ;;  %s1768_s11 = sphi %s1803_s11, %s2155_s11   ;;  %s1764_s10 = sphi %s1801_s10, %s2154_s10   ;;  %s1760_s9 = sphi %s1799_s9, %s2153_s9  }
   0x7   : > { %p39_p0 = scmp.ne.s32.totalorder %s1764_s10, %s1760_s9  ;;  %p2137_p1 = scmp.eq.s32.totalorder %s1820_s13, 0 }
   0x8   : > { %p90_p3 = scmp.eq.s32.totalorder %s1352_s14, 1  ;;  %p1353_p5 = scmp.ge.s32.totalorder %s1772_s12, 1 }
   0x9   : > { %p1829_p4 = por %p2137_p1, %p39_p0  ;;  %p97_p7 = scmp.lt.s32.totalorder %s1772_s12, 3 }
   0xa   : > { %p1834_p6 = por %p90_p3, %p39_p0  ;;  %s1774_s18 = smov [#allocation5]  }
   0xb   : > { %s2140_s15 = scalar_select %p1829_p4, 1, 0 }
   0xc   : > { %s2141_s16 = scalar_select %p1834_p6, 1, 0 }
   0xd   : > { %p1839_p8 = pnand %p1353_p5, %p97_p7  ;;  %s109_s19 = sshll.u32 %s1774_s18, 4  ;;  %s1843_s19 = int_to_ptr.vmem [resolvable:$true] %s109_s19 }
   0xe   : > { %s1855_s21 = sadd.s32 1, %s1772_s12   ;;  %s26_s22 = sadd.s32 1, %s1768_s11 }
   0xf   : > { %s2142_s17 = scalar_select %p1839_p8, 1, 0 }
  0x10   : > { %p1540_p9 = pneg %p1839_p8  ;;  %s23_s23 = ssub.s32 %s1772_s12, %s1855_s21 }
  0x11   : > { %s1644_s26 = scalar_lea.hbm %s2135_s1, 4096 }
  0x12   : > { %p1850_p11 = pnand %p1540_p9, %p2137_p1  ;;  %p1645_p12 = scmp.ne.s32.totalorder %s2135_s1, %s1644_s26 }
  0x13   : > { %p1651_p5 = scmp.lt.u32.totalorder %s1644_s26, %s2135_s1 }
  0x14   : > { %p1646_p13 = pneg %p1850_p11 }
  0x16   : > { %p1647_p0 = pnand %p1646_p13, %p1645_p12 }
  0x18   : > { %p1648_p3 = pneg %p1647_p0 }
  0x1a   : > { %p1653_p7 = pnand %p1651_p5, %p1648_p3 }
  0x1c   : > { %1656 = shalt.err (!%p1653_p7)
}
  0x1d   : > { %s1657_s3 = scalar_lea.vmem %s1843_s19, 4096  ;;  %p1665_p2 = scmp.lt.s32.totalorder %s1843_s19, %s1843_s19 }
  0x1e   : > { %p1658_p9 = scmp.ne.s32.totalorder %s1843_s19, %s1657_s3  ;;  %p1666_p6 = scmp.lt.s32.totalorder %s1657_s3, %s1657_s3 }
  0x20   : > { %p1660_p10 = pnand %p1658_p9, %p1646_p13  ;;  %p1667_p4 = por %p1666_p6, %p1665_p2 }
  0x22   : > { %p1661_p1 = pneg %p1660_p10 }
  0x24   : > { %p1668_p8 = pnand %p1667_p4, %p1661_p1 }
  0x26   : > { %1671 = shalt.err (!%p1668_p8)
}
  0x27   : > { %s1775_s4 = smov 256   ;;  %s1776_s5 = smov 16  }
  0x28   : > { %1543 = dma.hbm_to_vmem [thread:$0]  (!%p1850_p11), %s2135_s1, 4096, %s1843_s19, [#allocation6], %s1775_s4, %s1775_s4, %s1776_s5  }
  0x29   : > { %p24_p2 = scmp.eq.s32.totalorder %s23_s23, 0  ;;  %p33_p1 = scmp.ne.s32.totalorder %s1768_s11, %s1764_s10 }
  0x2a   : > { %p34_p4 = scmp.eq.s32.totalorder %s1772_s12, 0  ;;  %p1553_p6 = scmp.lt.s32.totalorder %s1772_s12, 2 }
  0x2b   : > { %s1886_s8 = scalar_select %p24_p2, %s1768_s11, %s26_s22  }
  0x2c   : > { %p35_p8 = por %p34_p4, %p33_p1  ;;  %p2144_p10 = scmp.eq.s32.totalorder %s1820_s13, 1 }
  0x2d   : > { %s123_s18 = sand.u32 1, %s1768_s11   ;;  %s1465_s24 = sshll.u32 %s1772_s12, 12 }
  0x2e   : > { %p1890_p12 = por %p2144_p10, %p33_p1  ;;  %s1356_s25 = sshll.u32 %s123_s18, 8 }
  0x2f   : > { %s1899_s27 = scalar_lea.hbm %s2134_s0, %s1465_s24  ;;  %s127_s19 = scalar_lea.vmem [#allocation2], %s1356_s25 }
  0x30   : > { %s134_s22 = sshll.u32 %s127_s19, 4  ;;  %p1901_p11 = pnand %p1553_p6, %p35_p8  ;;  %s1905_s22 = int_to_ptr.vmem [resolvable:$true] %s134_s22 }
  0x31   : > { %s1907_s28 = scalar_lea.sflag [#allocation3], %s123_s18  ;;  %s1672_s29 = scalar_lea.hbm %s1899_s27, 4096 }
  0x32   : > { %p1673_p13 = scmp.ne.s32.totalorder %s1899_s27, %s1672_s29  ;;  %p1674_p0 = pneg %p1901_p11 }
  0x33   : > { %s1677_s4 = scalar_lea.hbm %s2134_s0, 8192  ;;  %p1678_p7 = scmp.lt.u32.totalorder %s1899_s27, %s2134_s0 }
  0x34   : > { %p1675_p3 = pnand %p1674_p0, %p1673_p13  ;;  %p1679_p9 = scmp.lt.u32.totalorder %s1677_s4, %s1672_s29 }
  0x35   : > { %p1681_p1 = scmp.lt.u32.totalorder %s1672_s29, %s1899_s27 }
  0x36   : > { %p1676_p5 = pneg %p1675_p3  ;;  %p1680_p2 = por %p1679_p9, %p1678_p7 }
  0x38   : > { %p1682_p4 = por %p1681_p1, %p1680_p2 }
  0x3a   : > { %p1683_p6 = pnand %p1682_p4, %p1676_p5 }
  0x3c   : > { %1686 = shalt.err (!%p1683_p6)
}
  0x3d   : > { %s1687_s7 = scalar_lea.vmem %s1905_s22, 4096  ;;  %s1777_s18 = smov [#allocation2]  }
  0x3e   : > { %p1688_p8 = scmp.ne.s32.totalorder %s1905_s22, %s1687_s7  ;;  %s1692_s24 = sshll.u32 %s1777_s18, 4  ;;  %s1693_s24 = int_to_ptr.vmem [resolvable:$false] %s1692_s24 }
  0x3f   : > { %s1694_s25 = scalar_lea.vmem %s1693_s24, 8192  ;;  %p1695_p3 = scmp.lt.s32.totalorder %s1905_s22, %s1693_s24 }
  0x40   : > { %p1690_p10 = pnand %p1688_p8, %p1674_p0  ;;  %p1696_p7 = scmp.lt.s32.totalorder %s1694_s25, %s1687_s7 }
  0x42   : > { %p1691_p13 = pneg %p1690_p10  ;;  %p1697_p9 = por %p1696_p7, %p1695_p3 }
  0x44   : > { %p1698_p2 = pnand %p1697_p9, %p1691_p13 }
  0x46   : > { %1701 = shalt.err (!%p1698_p2)
}
  0x47   : > { %s1778_s20 = smov 128   ;;  %s1779_s26 = smov 8  }
  0x48   : > { %1547 = dma.hbm_to_vmem [thread:$0]  (!%p1901_p11), %s1899_s27, 4096, %s1905_s22, %s1907_s28, %s1778_s20, %s1778_s20, %s1779_s26  }
  0x49   : > { %p2147_p0 = scmp.ne.s32.totalorder %s2142_s17, 0 }
  0x4a   : > { %s1938_s19 = sand.u32 (!%p2147_p0), 1, %s1764_s10   ;;  %p2148_p5 = scmp.ne.s32.totalorder (!%p2147_p0), %s2140_s15, 0 }
  0x4b   : > { %146 = sbr.rel (%p2147_p0) target bundleno = 472 (0x1d8), region = 28  ;;  %s1360_s29 = sshll.u32 (!%p2147_p0), %s1938_s19, 8 }
  0x4c   : > { %s149_s30 = scalar_lea.sflag (!%p2147_p0), [#allocation3], %s1938_s19  ;;  %s1942_s3 = scalar_lea.vmem (!%p2147_p0), [#allocation2], %s1360_s29 }
  0x52   : > { %1747 = dma.done.wait (%p2148_p5), %s149_s30, 4096  }
  0x53   : > { %1749 = vsyncadd (%p2148_p5), %s149_s30, 4294963200  ;;  %p2149_p11 = scmp.eq.s32.totalorder %s1820_s13, 0 }
  0x55   : > { %1751 = dma.done.wait (%p2149_p11), [#allocation6], 4096   ;;  %p2150_p1 = pmov %p2149_p11 }
  0x56   : > { %v1780_v0 = vmov 0   ;;  %v1596_v1 = vld [vmem:[#allocation5 + $0x4] ss:$16 sps:$4 sm:$0xff]   ;;  %v1598_v2 = vld [vmem:[#allocation5 + $0xc] ss:$16 sps:$4 sm:$0xff]   ;;  %s1362_s15 = sshll.u32 %s1938_s19, 9 }
  0x57   : > { %1753 = vsyncadd (%p2150_p1), [#allocation6], 4294963200  ;;  %452 = vmatprep.mubr.bf16.mxu0 %v1780_v0  ;;  %645 = vmatprep.mubr.bf16.mxu1 %v1780_v0  ;;  %v1600_v3 = vld [vmem:[#allocation5] ss:$16 sps:$4 sm:$0xff]   ;;  %v1601_v4 = vld [vmem:[#allocation5 + $0x8] ss:$16 sps:$4 sm:$0xff]  }
  0x58   : > { %420 = vmatprep.subr.bf16.mxu0 %v1596_v1  ;;  %613 = vmatprep.subr.bf16.mxu1 %v1598_v2  ;;  %v1602_v5 = vld [vmem:[#allocation5 + $0x24] ss:$16 sps:$4 sm:$0xff]   ;;  %v1604_v6 = vld [vmem:[#allocation5 + $0x2c] ss:$16 sps:$4 sm:$0xff]   ;;  %v1606_v7 = vld [vmem:[#allocation5 + $0x20] ss:$16 sps:$4 sm:$0xff]  }
  0x59   : > { %421 = vmatpush1.bf16.msra.mxu0 %v1600_v3  ;;  %614 = vmatpush1.bf16.msra.mxu1 %v1601_v4  ;;  %v1607_v8 = vld [vmem:[#allocation5 + $0x28] ss:$16 sps:$4 sm:$0xff]   ;;  %v1608_v9 = vld [vmem:[#allocation5 + $0x44] ss:$16 sps:$4 sm:$0xff]   ;;  %v1610_v10 = vld [vmem:[#allocation5 + $0x4c] ss:$16 sps:$4 sm:$0xff]  }
  0x5a   : > { %422 = vmatprep.subr.bf16.mxu0 %v1602_v5  ;;  %615 = vmatprep.subr.bf16.mxu1 %v1604_v6  ;;  %v1612_v11 = vld [vmem:[#allocation5 + $0x40] ss:$16 sps:$4 sm:$0xff]   ;;  %v1613_v12 = vld [vmem:[#allocation5 + $0x48] ss:$16 sps:$4 sm:$0xff]   ;;  %v1614_v13 = vld [vmem:[#allocation5 + $0x64] ss:$16 sps:$4 sm:$0xff]  }
  0x5b   : > { %v1616_v14 = vld [vmem:[#allocation5 + $0x6c] ss:$16 sps:$4 sm:$0xff]   ;;  %v1618_v15 = vld [vmem:[#allocation5 + $0x60] ss:$16 sps:$4 sm:$0xff]   ;;  %v1619_v16 = vld [vmem:[#allocation5 + $0x68] ss:$16 sps:$4 sm:$0xff]  }
  0x5c   : > { %v1620_v17 = vld [vmem:[#allocation5 + $0x84] ss:$16 sps:$4 sm:$0xff]   ;;  %v1622_v18 = vld [vmem:[#allocation5 + $0x8c] ss:$16 sps:$4 sm:$0xff]   ;;  %v1624_v19 = vld [vmem:[#allocation5 + $0x80] ss:$16 sps:$4 sm:$0xff]  }
  0x5d   : > { %423 = vmatpush1.bf16.msra.mxu0 %v1606_v7  ;;  %616 = vmatpush1.bf16.msra.mxu1 %v1607_v8  ;;  %v1625_v20 = vld [vmem:[#allocation5 + $0x88] ss:$16 sps:$4 sm:$0xff]   ;;  %v1626_v21 = vld [vmem:[#allocation5 + $0xa4] ss:$16 sps:$4 sm:$0xff]   ;;  %v1628_v22 = vld [vmem:[#allocation5 + $0xac] ss:$16 sps:$4 sm:$0xff]  }
  0x5e   : > { %424 = vmatprep.subr.bf16.mxu0 %v1608_v9  ;;  %617 = vmatprep.subr.bf16.mxu1 %v1610_v10  ;;  %v1630_v23 = vld [vmem:[#allocation5 + $0xa0] ss:$16 sps:$4 sm:$0xff]   ;;  %v1631_v24 = vld [vmem:[#allocation5 + $0xa8] ss:$16 sps:$4 sm:$0xff]   ;;  %v1632_v25 = vld [vmem:[#allocation5 + $0xc4] ss:$16 sps:$4 sm:$0xff]  }
  0x5f   : > { %v1634_v26 = vld [vmem:[#allocation5 + $0xcc] ss:$16 sps:$4 sm:$0xff]   ;;  %v1636_v27 = vld [vmem:[#allocation5 + $0xc0] ss:$16 sps:$4 sm:$0xff]   ;;  %v1637_v28 = vld [vmem:[#allocation5 + $0xc8] ss:$16 sps:$4 sm:$0xff]  }
  0x60   : > { %v1638_v29 = vld [vmem:[#allocation5 + $0xe4] ss:$16 sps:$4 sm:$0xff]   ;;  %v1640_v30 = vld [vmem:[#allocation5 + $0xec] ss:$16 sps:$4 sm:$0xff]   ;;  %v1642_v31 = vld [vmem:[#allocation5 + $0xe0] ss:$16 sps:$4 sm:$0xff]  }
  0x61   : > { %425 = vmatpush1.bf16.msra.mxu0 %v1612_v11  ;;  %618 = vmatpush1.bf16.msra.mxu1 %v1613_v12  ;;  %v1643_v32 = vld [vmem:[#allocation5 + $0xe8] ss:$16 sps:$4 sm:$0xff]   ;;  %v180_v33 = vld [vmem:[%s1942_s3] sm:$0xff]  ;;  %v182_v36 = vld [vmem:[%s1942_s3 + $0x10] sm:$0xff]  ;;  %s2017_s17 = scalar_lea.vmem [#allocation7], %s1362_s15  ;;  %s1531_s27 = sshll.u32 %s1820_s13, 13 }
  0x62   : > { %426 = vmatprep.subr.bf16.mxu0 %v1614_v13  ;;  %619 = vmatprep.subr.bf16.mxu1 %v1616_v14  ;;  %v181_v34 = vld [vmem:[%s1942_s3 + $0x8] sm:$0xff]  ;;  %v183_v37 = vld [vmem:[%s1942_s3 + $0x18] sm:$0xff]  ;;  %v184_v39 = vld [vmem:[%s1942_s3 + $0x20] sm:$0xff]  ;;  %s1269_s22 = sshll.u32 %s2017_s17, 4  ;;  %s2084_s4 = scalar_lea.hbm %s2136_s2, %s1531_s27  ;;  %s2086_s22 = int_to_ptr.vmem [resolvable:$true] %s1269_s22 }
  0x63   : > { %v212_v35 = vpack.c.bf16 %v181_v34, %v180_v33  ;;  %v213_v38 = vpack.c.bf16 %v183_v37, %v182_v36  ;;  %v185_v40 = vld [vmem:[%s1942_s3 + $0x28] sm:$0xff]  ;;  %v186_v42 = vld [vmem:[%s1942_s3 + $0x30] sm:$0xff]  ;;  %v187_v43 = vld [vmem:[%s1942_s3 + $0x38] sm:$0xff]  ;;  %s1255_s13 = scalar_lea.sflag [#allocation4], %s1938_s19  ;;  %s1702_s5 = scalar_lea.vmem %s2086_s22, 8192 }
  0x64   : > { %v214_v41 = vpack.c.bf16 %v185_v40, %v184_v39  ;;  %v215_v44 = vpack.c.bf16 %v187_v43, %v186_v42  ;;  %v188_v45 = vld [vmem:[%s1942_s3 + $0x40] sm:$0xff]  ;;  %v189_v46 = vld [vmem:[%s1942_s3 + $0x48] sm:$0xff]  ;;  %v190_v48 = vld [vmem:[%s1942_s3 + $0x50] sm:$0xff]  ;;  %p1703_p4 = scmp.ne.s32.totalorder %s2086_s22, %s1702_s5  ;;  %s1781_s6 = smov [#allocation7]  }
  0x65   : > { %427 = vmatpush1.bf16.msra.mxu0 %v1618_v15  ;;  %620 = vmatpush1.bf16.msra.mxu1 %v1619_v16  ;;  %v216_v47 = vpack.c.bf16 %v189_v46, %v188_v45  ;;  %v191_v49 = vld [vmem:[%s1942_s3 + $0x58] sm:$0xff]  ;;  %v192_v51 = vld [vmem:[%s1942_s3 + $0x60] sm:$0xff]  ;;  %v193_v52 = vld [vmem:[%s1942_s3 + $0x68] sm:$0xff]  ;;  %s1706_s7 = sshll.u32 %s1781_s6, 4  ;;  %s1707_s7 = int_to_ptr.vmem [resolvable:$false] %s1706_s7 }
  0x66   : > { %428 = vmatprep.subr.bf16.mxu0 %v1620_v17  ;;  %621 = vmatprep.subr.bf16.mxu1 %v1622_v18  ;;  %v217_v50 = vpack.c.bf16 %v191_v49, %v190_v48  ;;  %v218_v53 = vpack.c.bf16 %v193_v52, %v192_v51  ;;  %v194_v54 = vld [vmem:[%s1942_s3 + $0x70] sm:$0xff]  ;;  %v195_v55 = vld [vmem:[%s1942_s3 + $0x78] sm:$0xff]  ;;  %v196_v57 = vld [vmem:[%s1942_s3 + $0x80] sm:$0xff]  ;;  %p1704_p6 = pnand %p1703_p4, %p1890_p12  ;;  %s1708_s18 = scalar_lea.vmem %s1707_s7, 16384 }
  0x67   : > { %v219_v56 = vpack.c.bf16 %v195_v55, %v194_v54  ;;  %v197_v58 = vld [vmem:[%s1942_s3 + $0x88] sm:$0xff]  ;;  %v198_v60 = vld [vmem:[%s1942_s3 + $0x90] sm:$0xff]  ;;  %v199_v61 = vld [vmem:[%s1942_s3 + $0x98] sm:$0xff]  ;;  %p1709_p10 = scmp.lt.s32.totalorder %s2086_s22, %s1707_s7  ;;  %p1710_p13 = scmp.lt.s32.totalorder %s1708_s18, %s1702_s5 }
  0x68   : > { %v220_v59 = vpack.c.bf16 %v197_v58, %v196_v57  ;;  %v221_v62 = vpack.c.bf16 %v199_v61, %v198_v60  ;;  %v200_v63 = vld [vmem:[%s1942_s3 + $0xa0] sm:$0xff]  ;;  %v201_v1 = vld [vmem:[%s1942_s3 + $0xa8] sm:$0xff]  ;;  %v202_v3 = vld [vmem:[%s1942_s3 + $0xb0] sm:$0xff]  ;;  %p1705_p8 = pneg %p1704_p6 }
  0x69   : > { %429 = vmatpush1.bf16.msra.mxu0 %v1624_v19  ;;  %622 = vmatpush1.bf16.msra.mxu1 %v1625_v20  ;;  %v222_v2 = vpack.c.bf16 %v201_v1, %v200_v63  ;;  %v203_v4 = vld [vmem:[%s1942_s3 + $0xb8] sm:$0xff]  ;;  %v204_v6 = vld [vmem:[%s1942_s3 + $0xc0] sm:$0xff]  ;;  %v205_v7 = vld [vmem:[%s1942_s3 + $0xc8] sm:$0xff]  ;;  %p1711_p3 = por %p1710_p13, %p1709_p10 }
  0x6a   : > { %430 = vmatprep.subr.bf16.mxu0 %v1626_v21  ;;  %623 = vmatprep.subr.bf16.mxu1 %v1628_v22  ;;  %v223_v5 = vpack.c.bf16 %v203_v4, %v202_v3  ;;  %v224_v8 = vpack.c.bf16 %v205_v7, %v204_v6  ;;  %v206_v9 = vld [vmem:[%s1942_s3 + $0xd0] sm:$0xff]  ;;  %v207_v10 = vld [vmem:[%s1942_s3 + $0xd8] sm:$0xff]  ;;  %v208_v12 = vld [vmem:[%s1942_s3 + $0xe0] sm:$0xff] }
  0x6b   : > { %v225_v11 = vpack.c.bf16 %v207_v10, %v206_v9  ;;  %v209_v13 = vld [vmem:[%s1942_s3 + $0xe8] sm:$0xff]  ;;  %v210_v15 = vld [vmem:[%s1942_s3 + $0xf0] sm:$0xff]  ;;  %v211_v16 = vld [vmem:[%s1942_s3 + $0xf8] sm:$0xff]  ;;  %p1712_p7 = pnand %p1711_p3, %p1705_p8 }
  0x6c   : > { %v226_v14 = vpack.c.bf16 %v209_v13, %v208_v12  ;;  %v227_v17 = vpack.c.bf16 %v211_v16, %v210_v15 }
  0x6d   : > { %431 = vmatpush1.bf16.msra.mxu0 %v1630_v23  ;;  %624 = vmatpush1.bf16.msra.mxu1 %v1631_v24 }
  0x6e   : > { %432 = vmatprep.subr.bf16.mxu0 %v1632_v25  ;;  %625 = vmatprep.subr.bf16.mxu1 %v1634_v26 }
  0x71   : > { %433 = vmatpush1.bf16.msra.mxu0 %v1636_v27  ;;  %626 = vmatpush1.bf16.msra.mxu1 %v1637_v28 }
  0x72   : > { %434 = vmatprep.subr.bf16.mxu0 %v1638_v29  ;;  %627 = vmatprep.subr.bf16.mxu1 %v1640_v30 }
  0x75   : > { %435 = vmatpush1.bf16.msra.mxu0 %v1642_v31  ;;  %628 = vmatpush1.bf16.msra.mxu1 %v1643_v32 }
  0x78   : > { %453 = vmatmul.mubr.bf16.vlgmr.msra.gmra.mrb[0].mxu0 %v212_v35  ;;  %646 = vmatmul.mubr.bf16.vlgmr.msra.gmra.mrb[0].mxu1 %v212_v35 }
  0x79   : > { %462 = vmatprep.mubr.bf16.mxu0 %v1780_v0  ;;  %655 = vmatprep.mubr.bf16.mxu1 %v1780_v0 }
  0x80   : > { %463 = vmatmul.mubr.bf16.gmra.mrb[4].mxu0 %v213_v38  ;;  %656 = vmatmul.mubr.bf16.gmra.mrb[4].mxu1 %v213_v38 }
  0x81   : > { %472 = vmatprep.mubr.bf16.mxu0 %v1780_v0  ;;  %665 = vmatprep.mubr.bf16.mxu1 %v1780_v0 }
  0x88   : > { %473 = vmatmul.mubr.bf16.gmra.mrb[8].mxu0 %v214_v41  ;;  %666 = vmatmul.mubr.bf16.gmra.mrb[8].mxu1 %v214_v41 }
  0x89   : > { %482 = vmatprep.mubr.bf16.mxu0 %v1780_v0  ;;  %675 = vmatprep.mubr.bf16.mxu1 %v1780_v0 }
  0x90   : > { %483 = vmatmul.mubr.bf16.gmra.mrb[12].mxu0 %v215_v44  ;;  %676 = vmatmul.mubr.bf16.gmra.mrb[12].mxu1 %v215_v44 }
  0x91   : > { %492 = vmatprep.mubr.bf16.mxu0 %v1780_v0  ;;  %685 = vmatprep.mubr.bf16.mxu1 %v1780_v0 }
  0x98   : > { %493 = vmatmul.mubr.bf16.gmra.mrb[16].mxu0 %v216_v47  ;;  %686 = vmatmul.mubr.bf16.gmra.mrb[16].mxu1 %v216_v47 }
  0x99   : > { %502 = vmatprep.mubr.bf16.mxu0 %v1780_v0  ;;  %695 = vmatprep.mubr.bf16.mxu1 %v1780_v0 }
  0xa0   : > { %503 = vmatmul.mubr.bf16.gmra.mrb[20].mxu0 %v217_v50  ;;  %696 = vmatmul.mubr.bf16.gmra.mrb[20].mxu1 %v217_v50 }
  0xa1   : > { %512 = vmatprep.mubr.bf16.mxu0 %v1780_v0  ;;  %705 = vmatprep.mubr.bf16.mxu1 %v1780_v0 }
  0xa8   : > { %513 = vmatmul.mubr.bf16.gmra.mrb[24].mxu0 %v218_v53  ;;  %706 = vmatmul.mubr.bf16.gmra.mrb[24].mxu1 %v218_v53 }
  0xa9   : > { %522 = vmatprep.mubr.bf16.mxu0 %v1780_v0  ;;  %715 = vmatprep.mubr.bf16.mxu1 %v1780_v0 }
  0xb0   : > { %523 = vmatmul.mubr.bf16.gmra.mrb[28].mxu0 %v219_v56  ;;  %716 = vmatmul.mubr.bf16.gmra.mrb[28].mxu1 %v219_v56 }
  0xb1   : > { %532 = vmatprep.mubr.bf16.mxu0 %v1780_v0  ;;  %725 = vmatprep.mubr.bf16.mxu1 %v1780_v0 }
  0xb8   : > { %533 = vmatmul.mubr.bf16.gmra.mrb[32].mxu0 %v220_v59  ;;  %726 = vmatmul.mubr.bf16.gmra.mrb[32].mxu1 %v220_v59 }
  0xb9   : > { %542 = vmatprep.mubr.bf16.mxu0 %v1780_v0  ;;  %735 = vmatprep.mubr.bf16.mxu1 %v1780_v0 }
  0xc0   : > { %543 = vmatmul.mubr.bf16.gmra.mrb[36].mxu0 %v221_v62  ;;  %736 = vmatmul.mubr.bf16.gmra.mrb[36].mxu1 %v221_v62 }
  0xc1   : > { %552 = vmatprep.mubr.bf16.mxu0 %v1780_v0  ;;  %745 = vmatprep.mubr.bf16.mxu1 %v1780_v0 }
  0xc8   : > { %553 = vmatmul.mubr.bf16.gmra.mrb[40].mxu0 %v222_v2  ;;  %746 = vmatmul.mubr.bf16.gmra.mrb[40].mxu1 %v222_v2 }
  0xc9   : > { %562 = vmatprep.mubr.bf16.mxu0 %v1780_v0  ;;  %755 = vmatprep.mubr.bf16.mxu1 %v1780_v0 }
  0xd0   : > { %563 = vmatmul.mubr.bf16.gmra.mrb[44].mxu0 %v223_v5  ;;  %756 = vmatmul.mubr.bf16.gmra.mrb[44].mxu1 %v223_v5 }
  0xd1   : > { %572 = vmatprep.mubr.bf16.mxu0 %v1780_v0  ;;  %765 = vmatprep.mubr.bf16.mxu1 %v1780_v0 }
  0xd8   : > { %573 = vmatmul.mubr.bf16.gmra.mrb[48].mxu0 %v224_v8  ;;  %766 = vmatmul.mubr.bf16.gmra.mrb[48].mxu1 %v224_v8 }
  0xd9   : > { %582 = vmatprep.mubr.bf16.mxu0 %v1780_v0  ;;  %775 = vmatprep.mubr.bf16.mxu1 %v1780_v0 }
  0xe0   : > { %583 = vmatmul.mubr.bf16.gmra.mrb[52].mxu0 %v225_v11  ;;  %776 = vmatmul.mubr.bf16.gmra.mrb[52].mxu1 %v225_v11 }
  0xe1   : > { %592 = vmatprep.mubr.bf16.mxu0 %v1780_v0  ;;  %785 = vmatprep.mubr.bf16.mxu1 %v1780_v0 }
  0xe8   : > { %593 = vmatmul.mubr.bf16.gmra.mrb[56].mxu0 %v226_v14  ;;  %786 = vmatmul.mubr.bf16.gmra.mrb[56].mxu1 %v226_v14 }
  0xe9   : > { %602 = vmatprep.mubr.bf16.mxu0 %v1780_v0  ;;  %795 = vmatprep.mubr.bf16.mxu1 %v1780_v0 }
  0xf0   : > { %603 = vmatmul.mubr.bf16.gmra.mrb[60].mxu0 %v227_v17  ;;  %796 = vmatmul.mubr.bf16.gmra.mrb[60].mxu1 %v227_v17 }
 0x14b   : > { %v454_v18 = vpop.f32.mrb[0].mxu0  ;;  %v647_v19 = vpop.f32.mrb[0].mxu1 }
 0x14c   : > { %v456_v20 = vpop.f32.mrb[1].mxu0  ;;  %v649_v21 = vpop.f32.mrb[1].mxu1 }
 0x14d   : > { %v1466_v22 = vpack.c.bf16 %v456_v20, %v454_v18  ;;  %v1467_v23 = vpack.c.bf16 %v649_v21, %v647_v19  ;;  %v458_v24 = vpop.f32.mrb[2].mxu0  ;;  %v651_v25 = vpop.f32.mrb[2].mxu1 }
 0x14e   : > { %v460_v26 = vpop.f32.mrb[3].mxu0  ;;  %v653_v27 = vpop.f32.mrb[3].mxu1 }
 0x14f   : > { %1190 = vst [vmem:[%s2017_s17] sm:$0xff] %v1466_v22  ;;  %1191 = vst [vmem:[%s2017_s17 + $0x8] sm:$0xff] %v1467_v23  ;;  %v1468_v0 = vpack.c.bf16 %v460_v26, %v458_v24  ;;  %v1469_v28 = vpack.c.bf16 %v653_v27, %v651_v25 }
 0x151   : > { %1192 = vst [vmem:[%s2017_s17 + $0x10] sm:$0xff] %v1468_v0  ;;  %1193 = vst [vmem:[%s2017_s17 + $0x18] sm:$0xff] %v1469_v28 }
 0x153   : > { %v464_v29 = vpop.f32.mrb[4].mxu0  ;;  %v657_v30 = vpop.f32.mrb[4].mxu1 }
 0x154   : > { %v466_v31 = vpop.f32.mrb[5].mxu0  ;;  %v659_v32 = vpop.f32.mrb[5].mxu1 }
 0x155   : > { %v1470_v33 = vpack.c.bf16 %v466_v31, %v464_v29  ;;  %v1471_v34 = vpack.c.bf16 %v659_v32, %v657_v30  ;;  %v468_v35 = vpop.f32.mrb[6].mxu0  ;;  %v661_v36 = vpop.f32.mrb[6].mxu1 }
 0x156   : > { %v470_v37 = vpop.f32.mrb[7].mxu0  ;;  %v663_v38 = vpop.f32.mrb[7].mxu1 }
 0x157   : > { %1194 = vst [vmem:[%s2017_s17 + $0x20] sm:$0xff] %v1470_v33  ;;  %1195 = vst [vmem:[%s2017_s17 + $0x28] sm:$0xff] %v1471_v34  ;;  %v1472_v39 = vpack.c.bf16 %v470_v37, %v468_v35  ;;  %v1473_v40 = vpack.c.bf16 %v663_v38, %v661_v36 }
 0x159   : > { %1196 = vst [vmem:[%s2017_s17 + $0x30] sm:$0xff] %v1472_v39  ;;  %1197 = vst [vmem:[%s2017_s17 + $0x38] sm:$0xff] %v1473_v40 }
 0x15b   : > { %v474_v41 = vpop.f32.mrb[8].mxu0  ;;  %v667_v42 = vpop.f32.mrb[8].mxu1 }
 0x15c   : > { %v476_v43 = vpop.f32.mrb[9].mxu0  ;;  %v669_v44 = vpop.f32.mrb[9].mxu1 }
 0x15d   : > { %v1474_v45 = vpack.c.bf16 %v476_v43, %v474_v41  ;;  %v1475_v46 = vpack.c.bf16 %v669_v44, %v667_v42  ;;  %v478_v47 = vpop.f32.mrb[10].mxu0  ;;  %v671_v48 = vpop.f32.mrb[10].mxu1 }
 0x15e   : > { %v480_v49 = vpop.f32.mrb[11].mxu0  ;;  %v673_v50 = vpop.f32.mrb[11].mxu1 }
 0x15f   : > { %1198 = vst [vmem:[%s2017_s17 + $0x40] sm:$0xff] %v1474_v45  ;;  %1199 = vst [vmem:[%s2017_s17 + $0x48] sm:$0xff] %v1475_v46  ;;  %v1476_v51 = vpack.c.bf16 %v480_v49, %v478_v47  ;;  %v1477_v52 = vpack.c.bf16 %v673_v50, %v671_v48 }
 0x161   : > { %1200 = vst [vmem:[%s2017_s17 + $0x50] sm:$0xff] %v1476_v51  ;;  %1201 = vst [vmem:[%s2017_s17 + $0x58] sm:$0xff] %v1477_v52 }
 0x163   : > { %v484_v53 = vpop.f32.mrb[12].mxu0  ;;  %v677_v54 = vpop.f32.mrb[12].mxu1 }
 0x164   : > { %v486_v55 = vpop.f32.mrb[13].mxu0  ;;  %v679_v56 = vpop.f32.mrb[13].mxu1 }
 0x165   : > { %v1478_v57 = vpack.c.bf16 %v486_v55, %v484_v53  ;;  %v1479_v58 = vpack.c.bf16 %v679_v56, %v677_v54  ;;  %v488_v59 = vpop.f32.mrb[14].mxu0  ;;  %v681_v60 = vpop.f32.mrb[14].mxu1 }
 0x166   : > { %v490_v61 = vpop.f32.mrb[15].mxu0  ;;  %v683_v62 = vpop.f32.mrb[15].mxu1 }
 0x167   : > { %1202 = vst [vmem:[%s2017_s17 + $0x60] sm:$0xff] %v1478_v57  ;;  %1203 = vst [vmem:[%s2017_s17 + $0x68] sm:$0xff] %v1479_v58  ;;  %v1480_v63 = vpack.c.bf16 %v490_v61, %v488_v59  ;;  %v1481_v1 = vpack.c.bf16 %v683_v62, %v681_v60 }
 0x169   : > { %1204 = vst [vmem:[%s2017_s17 + $0x70] sm:$0xff] %v1480_v63  ;;  %1205 = vst [vmem:[%s2017_s17 + $0x78] sm:$0xff] %v1481_v1 }
 0x16b   : > { %v494_v2 = vpop.f32.mrb[16].mxu0  ;;  %v687_v3 = vpop.f32.mrb[16].mxu1 }
 0x16c   : > { %v496_v4 = vpop.f32.mrb[17].mxu0  ;;  %v689_v5 = vpop.f32.mrb[17].mxu1 }
 0x16d   : > { %v1482_v6 = vpack.c.bf16 %v496_v4, %v494_v2  ;;  %v1483_v7 = vpack.c.bf16 %v689_v5, %v687_v3  ;;  %v498_v8 = vpop.f32.mrb[18].mxu0  ;;  %v691_v9 = vpop.f32.mrb[18].mxu1 }
 0x16e   : > { %v500_v10 = vpop.f32.mrb[19].mxu0  ;;  %v693_v11 = vpop.f32.mrb[19].mxu1 }
 0x16f   : > { %1206 = vst [vmem:[%s2017_s17 + $0x80] sm:$0xff] %v1482_v6  ;;  %1207 = vst [vmem:[%s2017_s17 + $0x88] sm:$0xff] %v1483_v7  ;;  %v1484_v12 = vpack.c.bf16 %v500_v10, %v498_v8  ;;  %v1485_v13 = vpack.c.bf16 %v693_v11, %v691_v9 }
 0x171   : > { %1208 = vst [vmem:[%s2017_s17 + $0x90] sm:$0xff] %v1484_v12  ;;  %1209 = vst [vmem:[%s2017_s17 + $0x98] sm:$0xff] %v1485_v13 }
 0x173   : > { %v504_v14 = vpop.f32.mrb[20].mxu0  ;;  %v697_v15 = vpop.f32.mrb[20].mxu1 }
 0x174   : > { %v506_v16 = vpop.f32.mrb[21].mxu0  ;;  %v699_v17 = vpop.f32.mrb[21].mxu1 }
 0x175   : > { %v1486_v18 = vpack.c.bf16 %v506_v16, %v504_v14  ;;  %v1487_v19 = vpack.c.bf16 %v699_v17, %v697_v15  ;;  %v508_v20 = vpop.f32.mrb[22].mxu0  ;;  %v701_v21 = vpop.f32.mrb[22].mxu1 }
 0x176   : > { %v510_v22 = vpop.f32.mrb[23].mxu0  ;;  %v703_v23 = vpop.f32.mrb[23].mxu1 }
 0x177   : > { %1210 = vst [vmem:[%s2017_s17 + $0xa0] sm:$0xff] %v1486_v18  ;;  %1211 = vst [vmem:[%s2017_s17 + $0xa8] sm:$0xff] %v1487_v19  ;;  %v1488_v24 = vpack.c.bf16 %v510_v22, %v508_v20  ;;  %v1489_v25 = vpack.c.bf16 %v703_v23, %v701_v21 }
 0x179   : > { %1212 = vst [vmem:[%s2017_s17 + $0xb0] sm:$0xff] %v1488_v24  ;;  %1213 = vst [vmem:[%s2017_s17 + $0xb8] sm:$0xff] %v1489_v25 }
 0x17b   : > { %v514_v26 = vpop.f32.mrb[24].mxu0  ;;  %v707_v27 = vpop.f32.mrb[24].mxu1 }
 0x17c   : > { %v516_v0 = vpop.f32.mrb[25].mxu0  ;;  %v709_v28 = vpop.f32.mrb[25].mxu1 }
 0x17d   : > { %v1490_v29 = vpack.c.bf16 %v516_v0, %v514_v26  ;;  %v1491_v30 = vpack.c.bf16 %v709_v28, %v707_v27  ;;  %v518_v31 = vpop.f32.mrb[26].mxu0  ;;  %v711_v32 = vpop.f32.mrb[26].mxu1 }
 0x17e   : > { %v520_v33 = vpop.f32.mrb[27].mxu0  ;;  %v713_v34 = vpop.f32.mrb[27].mxu1 }
 0x17f   : > { %1214 = vst [vmem:[%s2017_s17 + $0xc0] sm:$0xff] %v1490_v29  ;;  %1215 = vst [vmem:[%s2017_s17 + $0xc8] sm:$0xff] %v1491_v30  ;;  %v1492_v35 = vpack.c.bf16 %v520_v33, %v518_v31  ;;  %v1493_v36 = vpack.c.bf16 %v713_v34, %v711_v32 }
 0x181   : > { %1216 = vst [vmem:[%s2017_s17 + $0xd0] sm:$0xff] %v1492_v35  ;;  %1217 = vst [vmem:[%s2017_s17 + $0xd8] sm:$0xff] %v1493_v36 }
 0x183   : > { %v524_v37 = vpop.f32.mrb[28].mxu0  ;;  %v717_v38 = vpop.f32.mrb[28].mxu1 }
 0x184   : > { %v526_v39 = vpop.f32.mrb[29].mxu0  ;;  %v719_v40 = vpop.f32.mrb[29].mxu1 }
 0x185   : > { %v1494_v41 = vpack.c.bf16 %v526_v39, %v524_v37  ;;  %v1495_v42 = vpack.c.bf16 %v719_v40, %v717_v38  ;;  %v528_v43 = vpop.f32.mrb[30].mxu0  ;;  %v721_v44 = vpop.f32.mrb[30].mxu1 }
 0x186   : > { %v530_v45 = vpop.f32.mrb[31].mxu0  ;;  %v723_v46 = vpop.f32.mrb[31].mxu1 }
 0x187   : > { %1218 = vst [vmem:[%s2017_s17 + $0xe0] sm:$0xff] %v1494_v41  ;;  %1219 = vst [vmem:[%s2017_s17 + $0xe8] sm:$0xff] %v1495_v42  ;;  %v1496_v47 = vpack.c.bf16 %v530_v45, %v528_v43  ;;  %v1497_v48 = vpack.c.bf16 %v723_v46, %v721_v44 }
 0x189   : > { %1220 = vst [vmem:[%s2017_s17 + $0xf0] sm:$0xff] %v1496_v47  ;;  %1221 = vst [vmem:[%s2017_s17 + $0xf8] sm:$0xff] %v1497_v48 }
 0x18b   : > { %v534_v49 = vpop.f32.mrb[32].mxu0  ;;  %v727_v50 = vpop.f32.mrb[32].mxu1 }
 0x18c   : > { %v536_v51 = vpop.f32.mrb[33].mxu0  ;;  %v729_v52 = vpop.f32.mrb[33].mxu1 }
 0x18d   : > { %v1498_v53 = vpack.c.bf16 %v536_v51, %v534_v49  ;;  %v1499_v54 = vpack.c.bf16 %v729_v52, %v727_v50  ;;  %v538_v55 = vpop.f32.mrb[34].mxu0  ;;  %v731_v56 = vpop.f32.mrb[34].mxu1 }
 0x18e   : > { %v540_v57 = vpop.f32.mrb[35].mxu0  ;;  %v733_v58 = vpop.f32.mrb[35].mxu1 }
 0x18f   : > { %1222 = vst [vmem:[%s2017_s17 + $0x100] sm:$0xff] %v1498_v53  ;;  %1223 = vst [vmem:[%s2017_s17 + $0x108] sm:$0xff] %v1499_v54  ;;  %v1500_v59 = vpack.c.bf16 %v540_v57, %v538_v55  ;;  %v1501_v60 = vpack.c.bf16 %v733_v58, %v731_v56 }
 0x191   : > { %1224 = vst [vmem:[%s2017_s17 + $0x110] sm:$0xff] %v1500_v59  ;;  %1225 = vst [vmem:[%s2017_s17 + $0x118] sm:$0xff] %v1501_v60 }
 0x193   : > { %v544_v61 = vpop.f32.mrb[36].mxu0  ;;  %v737_v62 = vpop.f32.mrb[36].mxu1 }
 0x194   : > { %v546_v63 = vpop.f32.mrb[37].mxu0  ;;  %v739_v1 = vpop.f32.mrb[37].mxu1 }
 0x195   : > { %v1502_v2 = vpack.c.bf16 %v546_v63, %v544_v61  ;;  %v1503_v3 = vpack.c.bf16 %v739_v1, %v737_v62  ;;  %v548_v4 = vpop.f32.mrb[38].mxu0  ;;  %v741_v5 = vpop.f32.mrb[38].mxu1 }
 0x196   : > { %v550_v6 = vpop.f32.mrb[39].mxu0  ;;  %v743_v7 = vpop.f32.mrb[39].mxu1 }
 0x197   : > { %1226 = vst [vmem:[%s2017_s17 + $0x120] sm:$0xff] %v1502_v2  ;;  %1227 = vst [vmem:[%s2017_s17 + $0x128] sm:$0xff] %v1503_v3  ;;  %v1504_v8 = vpack.c.bf16 %v550_v6, %v548_v4  ;;  %v1505_v9 = vpack.c.bf16 %v743_v7, %v741_v5 }
 0x199   : > { %1228 = vst [vmem:[%s2017_s17 + $0x130] sm:$0xff] %v1504_v8  ;;  %1229 = vst [vmem:[%s2017_s17 + $0x138] sm:$0xff] %v1505_v9 }
 0x19b   : > { %v554_v10 = vpop.f32.mrb[40].mxu0  ;;  %v747_v11 = vpop.f32.mrb[40].mxu1 }
 0x19c   : > { %v556_v12 = vpop.f32.mrb[41].mxu0  ;;  %v749_v13 = vpop.f32.mrb[41].mxu1 }
 0x19d   : > { %v1506_v14 = vpack.c.bf16 %v556_v12, %v554_v10  ;;  %v1507_v15 = vpack.c.bf16 %v749_v13, %v747_v11  ;;  %v558_v16 = vpop.f32.mrb[42].mxu0  ;;  %v751_v17 = vpop.f32.mrb[42].mxu1 }
 0x19e   : > { %v560_v18 = vpop.f32.mrb[43].mxu0  ;;  %v753_v19 = vpop.f32.mrb[43].mxu1 }
 0x19f   : > { %1230 = vst [vmem:[%s2017_s17 + $0x140] sm:$0xff] %v1506_v14  ;;  %1231 = vst [vmem:[%s2017_s17 + $0x148] sm:$0xff] %v1507_v15  ;;  %v1508_v20 = vpack.c.bf16 %v560_v18, %v558_v16  ;;  %v1509_v21 = vpack.c.bf16 %v753_v19, %v751_v17 }
 0x1a1   : > { %1232 = vst [vmem:[%s2017_s17 + $0x150] sm:$0xff] %v1508_v20  ;;  %1233 = vst [vmem:[%s2017_s17 + $0x158] sm:$0xff] %v1509_v21 }
 0x1a3   : > { %v564_v22 = vpop.f32.mrb[44].mxu0  ;;  %v757_v23 = vpop.f32.mrb[44].mxu1 }
 0x1a4   : > { %v566_v24 = vpop.f32.mrb[45].mxu0  ;;  %v759_v25 = vpop.f32.mrb[45].mxu1 }
 0x1a5   : > { %v1510_v26 = vpack.c.bf16 %v566_v24, %v564_v22  ;;  %v1511_v27 = vpack.c.bf16 %v759_v25, %v757_v23  ;;  %v568_v0 = vpop.f32.mrb[46].mxu0  ;;  %v761_v28 = vpop.f32.mrb[46].mxu1 }
 0x1a6   : > { %v570_v29 = vpop.f32.mrb[47].mxu0  ;;  %v763_v30 = vpop.f32.mrb[47].mxu1 }
 0x1a7   : > { %1234 = vst [vmem:[%s2017_s17 + $0x160] sm:$0xff] %v1510_v26  ;;  %1235 = vst [vmem:[%s2017_s17 + $0x168] sm:$0xff] %v1511_v27  ;;  %v1512_v31 = vpack.c.bf16 %v570_v29, %v568_v0  ;;  %v1513_v32 = vpack.c.bf16 %v763_v30, %v761_v28 }
 0x1a9   : > { %1236 = vst [vmem:[%s2017_s17 + $0x170] sm:$0xff] %v1512_v31  ;;  %1237 = vst [vmem:[%s2017_s17 + $0x178] sm:$0xff] %v1513_v32 }
 0x1ab   : > { %v574_v33 = vpop.f32.mrb[48].mxu0  ;;  %v767_v34 = vpop.f32.mrb[48].mxu1 }
 0x1ac   : > { %v576_v35 = vpop.f32.mrb[49].mxu0  ;;  %v769_v36 = vpop.f32.mrb[49].mxu1 }
 0x1ad   : > { %v1514_v37 = vpack.c.bf16 %v576_v35, %v574_v33  ;;  %v1515_v38 = vpack.c.bf16 %v769_v36, %v767_v34  ;;  %v578_v39 = vpop.f32.mrb[50].mxu0  ;;  %v771_v40 = vpop.f32.mrb[50].mxu1 }
 0x1ae   : > { %v580_v41 = vpop.f32.mrb[51].mxu0  ;;  %v773_v42 = vpop.f32.mrb[51].mxu1 }
 0x1af   : > { %1238 = vst [vmem:[%s2017_s17 + $0x180] sm:$0xff] %v1514_v37  ;;  %1239 = vst [vmem:[%s2017_s17 + $0x188] sm:$0xff] %v1515_v38  ;;  %v1516_v43 = vpack.c.bf16 %v580_v41, %v578_v39  ;;  %v1517_v44 = vpack.c.bf16 %v773_v42, %v771_v40 }
 0x1b1   : > { %1240 = vst [vmem:[%s2017_s17 + $0x190] sm:$0xff] %v1516_v43  ;;  %1241 = vst [vmem:[%s2017_s17 + $0x198] sm:$0xff] %v1517_v44 }
 0x1b3   : > { %v584_v45 = vpop.f32.mrb[52].mxu0  ;;  %v777_v46 = vpop.f32.mrb[52].mxu1 }
 0x1b4   : > { %v586_v47 = vpop.f32.mrb[53].mxu0  ;;  %v779_v48 = vpop.f32.mrb[53].mxu1 }
 0x1b5   : > { %v1518_v49 = vpack.c.bf16 %v586_v47, %v584_v45  ;;  %v1519_v50 = vpack.c.bf16 %v779_v48, %v777_v46  ;;  %v588_v51 = vpop.f32.mrb[54].mxu0  ;;  %v781_v52 = vpop.f32.mrb[54].mxu1 }
 0x1b6   : > { %v590_v53 = vpop.f32.mrb[55].mxu0  ;;  %v783_v54 = vpop.f32.mrb[55].mxu1 }
 0x1b7   : > { %1242 = vst [vmem:[%s2017_s17 + $0x1a0] sm:$0xff] %v1518_v49  ;;  %1243 = vst [vmem:[%s2017_s17 + $0x1a8] sm:$0xff] %v1519_v50  ;;  %v1520_v55 = vpack.c.bf16 %v590_v53, %v588_v51  ;;  %v1521_v56 = vpack.c.bf16 %v783_v54, %v781_v52 }
 0x1b9   : > { %1244 = vst [vmem:[%s2017_s17 + $0x1b0] sm:$0xff] %v1520_v55  ;;  %1245 = vst [vmem:[%s2017_s17 + $0x1b8] sm:$0xff] %v1521_v56 }
 0x1bb   : > { %v594_v57 = vpop.f32.mrb[56].mxu0  ;;  %v787_v58 = vpop.f32.mrb[56].mxu1 }
 0x1bc   : > { %v596_v59 = vpop.f32.mrb[57].mxu0  ;;  %v789_v60 = vpop.f32.mrb[57].mxu1 }
 0x1bd   : > { %v1522_v61 = vpack.c.bf16 %v596_v59, %v594_v57  ;;  %v1523_v62 = vpack.c.bf16 %v789_v60, %v787_v58  ;;  %v598_v63 = vpop.f32.mrb[58].mxu0  ;;  %v791_v1 = vpop.f32.mrb[58].mxu1 }
 0x1be   : > { %v600_v2 = vpop.f32.mrb[59].mxu0  ;;  %v793_v3 = vpop.f32.mrb[59].mxu1 }
 0x1bf   : > { %1246 = vst [vmem:[%s2017_s17 + $0x1c0] sm:$0xff] %v1522_v61  ;;  %1247 = vst [vmem:[%s2017_s17 + $0x1c8] sm:$0xff] %v1523_v62  ;;  %v1524_v4 = vpack.c.bf16 %v600_v2, %v598_v63  ;;  %v1525_v5 = vpack.c.bf16 %v793_v3, %v791_v1 }
 0x1c1   : > { %1248 = vst [vmem:[%s2017_s17 + $0x1d0] sm:$0xff] %v1524_v4  ;;  %1249 = vst [vmem:[%s2017_s17 + $0x1d8] sm:$0xff] %v1525_v5 }
 0x1c3   : > { %v604_v6 = vpop.f32.mrb[60].mxu0  ;;  %v797_v7 = vpop.f32.mrb[60].mxu1 }
 0x1c4   : > { %v606_v8 = vpop.f32.mrb[61].mxu0  ;;  %v799_v9 = vpop.f32.mrb[61].mxu1 }
 0x1c5   : > { %v1526_v10 = vpack.c.bf16 %v606_v8, %v604_v6  ;;  %v1527_v11 = vpack.c.bf16 %v799_v9, %v797_v7  ;;  %v608_v12 = vpop.f32.mrb[62].mxu0  ;;  %v801_v13 = vpop.f32.mrb[62].mxu1 }
 0x1c6   : > { %v610_v14 = vpop.f32.mrb[63].mxu0  ;;  %v803_v15 = vpop.f32.mrb[63].mxu1 }
 0x1c7   : > { %1250 = vst [vmem:[%s2017_s17 + $0x1e0] sm:$0xff] %v1526_v10  ;;  %1251 = vst [vmem:[%s2017_s17 + $0x1e8] sm:$0xff] %v1527_v11  ;;  %v1528_v16 = vpack.c.bf16 %v610_v14, %v608_v12  ;;  %v1529_v17 = vpack.c.bf16 %v803_v15, %v801_v13 }
 0x1c9   : > { %1252 = vst [vmem:[%s2017_s17 + $0x1f0] sm:$0xff] %v1528_v16  ;;  %1253 = vst [vmem:[%s2017_s17 + $0x1f8] sm:$0xff] %v1529_v17 }
 0x1ca   : > { %1715 = shalt.err (!%p1712_p7)
}
 0x1cb   : > { %s1716_s24 = scalar_lea.hbm %s2084_s4, 8192  ;;  %s1720_s26 = scalar_lea.hbm %s2136_s2, 16384 }
 0x1cc   : > { %p1717_p9 = scmp.ne.s32.totalorder %s2084_s4, %s1716_s24  ;;  %p1721_p5 = scmp.lt.u32.totalorder %s2084_s4, %s2136_s2 }
 0x1cd   : > { %p1722_p11 = scmp.lt.u32.totalorder %s1720_s26, %s1716_s24  ;;  %p1724_p4 = scmp.lt.u32.totalorder %s1716_s24, %s2084_s4 }
 0x1ce   : > { %p1718_p2 = pnand %p1717_p9, %p1890_p12 }
 0x1cf   : > { %p1723_p1 = por %p1722_p11, %p1721_p5 }
 0x1d0   : > { %p1719_p0 = pneg %p1718_p2 }
 0x1d1   : > { %p1725_p6 = por %p1724_p4, %p1723_p1 }
 0x1d3   : > { %p1726_p8 = pnand %p1725_p6, %p1719_p0 }
 0x1d5   : > { %1729 = shalt.err (!%p1726_p8)
}
 0x1d6   : > { %s1782_s3 = smov 256   ;;  %s1783_s15 = smov 16  }
 0x1d7   : > { %1538 = dma.vmem_to_hbm [thread:$0]  (%p1890_p12), %s2086_s22, 8192, %s2084_s4, %s1255_s13, %s1782_s3, %s1782_s3, %s1783_s15  }
 0x1d8 PF: > { %s1284_s17 = sand.u32 1, %s1760_s9   ;;  %p2151_p10 = scmp.ne.s32.totalorder %s2141_s16, 0 }
 0x1d9   : > { %p2152_p13 = scmp.ge.s32.totalorder %s1772_s12, 2  ;;  %s1285_s27 = scalar_lea.sflag [#allocation4], %s1284_s17 }
 0x1db   : > { %p1549_p3 = pnand %p2152_p13, %p2151_p10 }
 0x1dd   : > { %1755 = dma.done.wait (!%p1549_p3), %s1285_s27, 8192  }
 0x1de   : > { %1757 = vsyncadd (!%p1549_p3), %s1285_s27, 4294959104  ;;  %p16_p7 = scmp.ge.s32.totalorder %s1855_s21, 4   ;;  %s2153_s9 = smov %s1764_s10 }
 0x1df   : > { %s2154_s10 = smov %s1768_s11  ;;  %s2155_s11 = smov %s1886_s8 }
 0x1e0   : > { %s2156_s12 = smov %s1855_s21  ;;  %18 = sbr.rel (!%p16_p7) target bundleno = 6 (0x6), region = 77 }
 0x1e7   :  { %1290 = vsyncpa [#allocation3], 1 }
 0x1e8   :  { %1292 = vsyncpa [#allocation3 + $0x1], 1 }
 0x1e9   :  { %1293 = vsyncpa [#allocation6], 1 }
 0x1ea   :  { %1294 = vsyncpa [#allocation4], 1 }
 0x1eb   :  { %1296 = vsyncpa [#allocation4 + $0x1], 1 }

</bundles_post_ra>
